<compile_context>
chip_gen: v7x
topology: tpu7x:2x2x1
jax: 0.10.0
libtpu: 0.0.40
codegen_flags: <defaults>
</compile_context>

<pallas_src>
import jax
import jax.numpy as jnp
from jax.experimental import pallas as pl
from jax.experimental.pallas import tpu as pltpu


def _round_up(n, m):
    return ((n + m - 1) // m) * m


def ffn_kernel(x_ref, w1_ref, b1_ref, w2_ref, b2_ref, w3_ref, b3_ref, o_ref):
    cdt = w1_ref.dtype  # MXU compute dtype (bf16 by default)
    # Layer 1: (TB, K1) @ (K1, 128) -> f32 acc, bias + ReLU in f32.
    h1 = jnp.dot(x_ref[...].astype(cdt), w1_ref[...],
                 preferred_element_type=jnp.float32)
    h1 = jnp.maximum(h1 + b1_ref[...], 0.0)
    # Layer 2: (TB, 128) @ (128, 256).
    h2 = jnp.dot(h1.astype(cdt), w2_ref[...],
                 preferred_element_type=jnp.float32)
    h2 = jnp.maximum(h2 + b2_ref[...], 0.0)
    # Layer 3: (TB, 256) @ (256, N3)  (no activation).
    h3 = jnp.dot(h2.astype(cdt), w3_ref[...],
                 preferred_element_type=jnp.float32)
    o_ref[...] = (h3 + b3_ref[...]).astype(o_ref.dtype)


def prepare_params(w1, b1, w2, b2, w3, b3, *, compute_dtype=jnp.bfloat16):
    """One-time param prep (hoist out of the forward path).

    Weights come in pre-transposed to (in, out).  Casts weights to the MXU
    compute dtype, lane-pads the last layer's output dim to a multiple of 128,
    and reshapes biases to (1, out) in f32 (bias-add happens in f32).
    """
    out_size = w3.shape[1]
    N3 = _round_up(out_size, 128)
    w3_p = jnp.zeros((w3.shape[0], N3), compute_dtype)
    w3_p = w3_p.at[:, :out_size].set(w3.astype(compute_dtype))
    b3_p = jnp.zeros((1, N3), jnp.float32).at[0, :out_size].set(
        b3.astype(jnp.float32))
    return dict(
        w1=w1.astype(compute_dtype),
        b1=b1.reshape(1, -1).astype(jnp.float32),
        w2=w2.astype(compute_dtype),
        b2=b2.reshape(1, -1).astype(jnp.float32),
        w3=w3_p,
        b3=b3_p,
        out_size=out_size,
    )


def feedforward_nn(x, params, *, block_b=512, num_core_splits=2):
    """x: (B, input_size) f32; params from prepare_params()."""
    B, in_size = x.shape
    w1, b1 = params["w1"], params["b1"]
    w2, b2 = params["w2"], params["b2"]
    w3, b3 = params["w3"], params["b3"]
    out_size = params["out_size"]

    K1, H1 = w1.shape
    H2 = w2.shape[1]
    N3 = w3.shape[1]
    assert K1 == in_size, (K1, in_size)

    # Batch: sublane-align only (pad at most 7 zero rows); K dim of x is left
    # unpadded (block last dim == full in_size is allowed by the (8,128) rule).
    B_pad = _round_up(B, 8)
    if B_pad != B:
        x_in = jnp.zeros((B_pad, in_size), x.dtype).at[:B, :].set(x)
    else:
        x_in = x

    # Batch tile: multiple of 8, <= block_b, and chosen so the "parallel" grid
    # axis has >= num_core_splits steps whenever the batch allows (v7x 2-TC).
    TB = min(_round_up(block_b, 8),
             max(8, _round_up(pl.cdiv(B_pad, num_core_splits), 8)))
    TB = min(TB, B_pad)
    grid = (pl.cdiv(B_pad, TB),)

    def resident(shape):
        # Constant index_map -> DMA'd once, stays VMEM-resident across steps.
        # TODO(synk): pl.Buffered(1) would halve their (tiny) double-buffer
        # footprint; irrelevant at these hidden dims, so left at default.
        return pl.BlockSpec(shape, lambda i: (0,) * len(shape))

    out_dtype = x.dtype
    flops = 2 * B_pad * (K1 * H1 + H1 * H2 + H2 * N3)
    bytes_accessed = int(
        x_in.size * x_in.dtype.itemsize
        + sum(a.size * a.dtype.itemsize for a in (w1, b1, w2, b2, w3, b3))
        + B_pad * N3 * jnp.dtype(out_dtype).itemsize)

    out_p = pl.pallas_call(
        ffn_kernel,
        out_shape=jax.ShapeDtypeStruct((B_pad, N3), out_dtype),
        grid=grid,
        in_specs=[
            pl.BlockSpec((TB, in_size), lambda i: (i, 0)),  # streamed x tiles
            resident((K1, H1)),
            resident((1, H1)),
            resident((H1, H2)),
            resident((1, H2)),
            resident((H2, N3)),
            resident((1, N3)),
        ],
        out_specs=pl.BlockSpec((TB, N3), lambda i: (i, 0)),
        compiler_params=pltpu.CompilerParams(
            dimension_semantics=("parallel",),  # v7x: shard steps across 2 TCs
        ),
        cost_estimate=pl.CostEstimate(
            flops=flops, transcendentals=0, bytes_accessed=bytes_accessed),
    )(x_in, w1, b1, w2, b2, w3, b3)

    # Strip batch sublane padding + output-feature lane padding.
    return out_p[:B, :out_size]


def init_params(key, input_size, output_size, dtype=jnp.float32):
    """nn.Linear-style init (uniform +/- 1/sqrt(fan_in)); weights stored (in, out)."""
    dims = [(input_size, 128), (128, 256), (256, output_size)]
    params = []
    for fan_in, fan_out in dims:
        key, kw, kb = jax.random.split(key, 3)
        bound = 1.0 / (fan_in ** 0.5)
        w = jax.random.uniform(kw, (fan_in, fan_out), dtype, -bound, bound)
        b = jax.random.uniform(kb, (fan_out,), dtype, -bound, bound)
        params += [w, b]
    return params


if __name__ == "__main__":
    key = jax.random.PRNGKey(0)
    key, kx = jax.random.split(key)

    batch = 64
    input_size = 32
    output_size = 16

    x = jax.random.normal(kx, (batch, input_size), dtype=jnp.float32)
    w1, b1, w2, b2, w3, b3 = init_params(key, input_size, output_size)

    # One-time param prep: bf16 weights, lane-padded layer-3, (1, out) biases.
    params = prepare_params(w1, b1, w2, b2, w3, b3)

    # block_b=32 with num_core_splits=2 -> TB=32, grid=(2,): exercises the
    # multi-step pipelined / two-core-shardable path even at this small batch.
    out = feedforward_nn(x, params, block_b=32)
    out = jax.block_until_ready(out)

    # Pure-JAX f32 reference; bf16 MXU operands -> loosened tolerance.
    h = jnp.maximum(x @ w1 + b1, 0.0)
    h = jnp.maximum(h @ w2 + b2, 0.0)
    ref = h @ w3 + b3
    assert out.shape == (batch, output_size)
    rel_err = jnp.max(jnp.abs(out - ref)) / (jnp.max(jnp.abs(ref)) + 1e-6)
    assert rel_err < 3e-2, f"relative error too large: {rel_err}"

    print("KERNEL_OK")
</pallas_src>

<mosaic_0001>
module attributes {stable_mosaic.version = 11 : i64} {
  func.func @ffn_kernel(%arg0: i32, %arg1: memref<32x32xf32, #tpu.memory_space<vmem>>, %arg2: memref<32x128xbf16, #tpu.memory_space<vmem>>, %arg3: memref<1x128xf32, #tpu.memory_space<vmem>>, %arg4: memref<128x256xbf16, #tpu.memory_space<vmem>>, %arg5: memref<1x256xf32, #tpu.memory_space<vmem>>, %arg6: memref<256x128xbf16, #tpu.memory_space<vmem>>, %arg7: memref<1x128xf32, #tpu.memory_space<vmem>>, %arg8: memref<32x128xf32, #tpu.memory_space<vmem>>) attributes {dimension_semantics = [#tpu.dimension_semantics<parallel>], iteration_bounds = array<i64: 2>, scalar_prefetch = 0 : i64, scratch_operands = 0 : i64, tpu.core_type = #tpu.core_type<tc>, window_params = [{transform_indices = @transform_0, window_bounds = array<i64: 32, 32>}, {pipeline_mode = #tpu.pipeline_mode<synchronous>, transform_indices = @transform_1, window_bounds = array<i64: 32, 128>}, {pipeline_mode = #tpu.pipeline_mode<synchronous>, transform_indices = @transform_2, window_bounds = array<i64: 1, 128>}, {pipeline_mode = #tpu.pipeline_mode<synchronous>, transform_indices = @transform_3, window_bounds = array<i64: 128, 256>}, {pipeline_mode = #tpu.pipeline_mode<synchronous>, transform_indices = @transform_4, window_bounds = array<i64: 1, 256>}, {pipeline_mode = #tpu.pipeline_mode<synchronous>, transform_indices = @transform_5, window_bounds = array<i64: 256, 128>}, {pipeline_mode = #tpu.pipeline_mode<synchronous>, transform_indices = @transform_6, window_bounds = array<i64: 1, 128>}, {transform_indices = @transform_7, window_bounds = array<i64: 32, 128>}]} {
    %c0 = arith.constant 0 : index
    %c0_0 = arith.constant 0 : index
    %0 = vector.load %arg1[%c0, %c0_0] : memref<32x32xf32, #tpu.memory_space<vmem>>, vector<32x32xf32>
    %1 = arith.truncf %0 : vector<32x32xf32> to vector<32x32xbf16>
    %c0_1 = arith.constant 0 : index
    %c0_2 = arith.constant 0 : index
    %2 = vector.load %arg2[%c0_1, %c0_2] : memref<32x128xbf16, #tpu.memory_space<vmem>>, vector<32x128xbf16>
    %cst = arith.constant dense<0.000000e+00> : vector<32x128xf32>
    %3 = tpu.matmul %1, %2, %cst {dimension_numbers = #tpu.dot_dimension_numbers<[1], [0], [0], [1], [0, 0, 1, 1], [], []>} : vector<32x32xbf16>, vector<32x128xbf16>, vector<32x128xf32> -> vector<32x128xf32>
    %c0_3 = arith.constant 0 : index
    %c0_4 = arith.constant 0 : index
    %4 = vector.load %arg3[%c0_3, %c0_4] : memref<1x128xf32, #tpu.memory_space<vmem>>, vector<1x128xf32>
    %5 = vector.broadcast %4 : vector<1x128xf32> to vector<32x128xf32>
    %6 = arith.addf %3, %5 : vector<32x128xf32>
    %cst_5 = arith.constant 0.000000e+00 : f32
    %7 = vector.broadcast %cst_5 : f32 to vector<32x128xf32>
    %8 = arith.maximumf %6, %7 : vector<32x128xf32>
    %9 = arith.truncf %8 : vector<32x128xf32> to vector<32x128xbf16>
    %c0_6 = arith.constant 0 : index
    %c0_7 = arith.constant 0 : index
    %10 = vector.load %arg4[%c0_6, %c0_7] : memref<128x256xbf16, #tpu.memory_space<vmem>>, vector<128x256xbf16>
    %cst_8 = arith.constant dense<0.000000e+00> : vector<32x256xf32>
    %11 = tpu.matmul %9, %10, %cst_8 {dimension_numbers = #tpu.dot_dimension_numbers<[1], [0], [0], [1], [0, 0, 1, 1], [], []>} : vector<32x128xbf16>, vector<128x256xbf16>, vector<32x256xf32> -> vector<32x256xf32>
    %c0_9 = arith.constant 0 : index
    %c0_10 = arith.constant 0 : index
    %12 = vector.load %arg5[%c0_9, %c0_10] : memref<1x256xf32, #tpu.memory_space<vmem>>, vector<1x256xf32>
    %13 = vector.broadcast %12 : vector<1x256xf32> to vector<32x256xf32>
    %14 = arith.addf %11, %13 : vector<32x256xf32>
    %cst_11 = arith.constant 0.000000e+00 : f32
    %15 = vector.broadcast %cst_11 : f32 to vector<32x256xf32>
    %16 = arith.maximumf %14, %15 : vector<32x256xf32>
    %17 = arith.truncf %16 : vector<32x256xf32> to vector<32x256xbf16>
    %c0_12 = arith.constant 0 : index
    %c0_13 = arith.constant 0 : index
    %18 = vector.load %arg6[%c0_12, %c0_13] : memref<256x128xbf16, #tpu.memory_space<vmem>>, vector<256x128xbf16>
    %cst_14 = arith.constant dense<0.000000e+00> : vector<32x128xf32>
    %19 = tpu.matmul %17, %18, %cst_14 {dimension_numbers = #tpu.dot_dimension_numbers<[1], [0], [0], [1], [0, 0, 1, 1], [], []>} : vector<32x256xbf16>, vector<256x128xbf16>, vector<32x128xf32> -> vector<32x128xf32>
    %c0_15 = arith.constant 0 : index
    %c0_16 = arith.constant 0 : index
    %20 = vector.load %arg7[%c0_15, %c0_16] : memref<1x128xf32, #tpu.memory_space<vmem>>, vector<1x128xf32>
    %21 = vector.broadcast %20 : vector<1x128xf32> to vector<32x128xf32>
    %22 = arith.addf %19, %21 : vector<32x128xf32>
    %c0_17 = arith.constant 0 : index
    %c0_18 = arith.constant 0 : index
    %23 = vector.load %arg8[%c0_17, %c0_18] : memref<32x128xf32, #tpu.memory_space<vmem>>, vector<32x128xf32>
    tpu.vector_store %arg8[%c0_17, %c0_18], %22 {strides = array<i32>} : memref<32x128xf32, #tpu.memory_space<vmem>>, vector<32x128xf32>,
    return
  }
  func.func @transform_0(%arg0: i32) -> (i32, i32) {
    %c0_i32 = arith.constant 0 : i32
    %c0_i32_0 = arith.constant 0 : i32
    return %arg0, %c0_i32 : i32, i32
  }
  func.func @transform_1(%arg0: i32) -> (i32, i32) {
    %c0_i32 = arith.constant 0 : i32
    %c0_i32_0 = arith.constant 0 : i32
    %c0_i32_1 = arith.constant 0 : i32
    return %c0_i32, %c0_i32_0 : i32, i32
  }
  func.func @transform_2(%arg0: i32) -> (i32, i32) {
    %c0_i32 = arith.constant 0 : i32
    %c0_i32_0 = arith.constant 0 : i32
    %c0_i32_1 = arith.constant 0 : i32
    return %c0_i32, %c0_i32_0 : i32, i32
  }
  func.func @transform_3(%arg0: i32) -> (i32, i32) {
    %c0_i32 = arith.constant 0 : i32
    %c0_i32_0 = arith.constant 0 : i32
    %c0_i32_1 = arith.constant 0 : i32
    return %c0_i32, %c0_i32_0 : i32, i32
  }
  func.func @transform_4(%arg0: i32) -> (i32, i32) {
    %c0_i32 = arith.constant 0 : i32
    %c0_i32_0 = arith.constant 0 : i32
    %c0_i32_1 = arith.constant 0 : i32
    return %c0_i32, %c0_i32_0 : i32, i32
  }
  func.func @transform_5(%arg0: i32) -> (i32, i32) {
    %c0_i32 = arith.constant 0 : i32
    %c0_i32_0 = arith.constant 0 : i32
    %c0_i32_1 = arith.constant 0 : i32
    return %c0_i32, %c0_i32_0 : i32, i32
  }
  func.func @transform_6(%arg0: i32) -> (i32, i32) {
    %c0_i32 = arith.constant 0 : i32
    %c0_i32_0 = arith.constant 0 : i32
    %c0_i32_1 = arith.constant 0 : i32
    return %c0_i32, %c0_i32_0 : i32, i32
  }
  func.func @transform_7(%arg0: i32) -> (i32, i32) {
    %c0_i32 = arith.constant 0 : i32
    %c0_i32_0 = arith.constant 0 : i32
    return %arg0, %c0_i32 : i32, i32
  }
}

</mosaic_0001>

<bundles_post_ra>
// kernel: tpu_custom_call.1
= control target key start
LH: loop header
LB: loop body
LE: loop exit
PB: predicated region body
PF: predicated region fallthrough
CT: control target
= control target key end

     0   :  { %12 = vsyncpa [#allocation3], 0  ;;  %s1434_s0 = inlined_call_operand.vmem [shape: f32[64,32], index: 0, kind: input, shape index: {}]   ;;  %s1435_s1 = inlined_call_operand.vmem [shape: bf16[32,128], index: 1, kind: input, shape index: {}]   ;;  %s1436_s2 = inlined_call_operand.vmem [shape: f32[1,128], index: 2, kind: input, shape index: {}]   ;;  %s1437_s3 = inlined_call_operand.hbm [shape: bf16[128,256], index: 3, kind: input, shape index: {}]   ;;  %s1438_s4 = inlined_call_operand.vmem [shape: f32[1,256], index: 4, kind: input, shape index: {}]   ;;  %s1439_s5 = inlined_call_operand.hbm [shape: bf16[256,128], index: 5, kind: input, shape index: {}]   ;;  %s1440_s6 = inlined_call_operand.vmem [shape: f32[1,128], index: 6, kind: input, shape index: {}]   ;;  %s1441_s7 = inlined_call_operand.hbm [shape: f32[64,128], index: 7, kind: output, shape index: {}]  }
   0x1   :  { %13 = vsyncpa [#allocation6], 0 }
   0x2   :  { %14 = vsyncpa [#allocation4], 0 }
   0x3   :  { %16 = vsyncpa [#allocation4 + $0x1], 0  ;;  %s1243_s24 = smov 0   ;;  %s1245_s25 = smov 0  }
   0x4   :  { %s1247_s26 = smov 0   ;;  %s1249_s27 = smov 0  }
   0x5 LB: > { %s1264_s28 = sadd.s32 4294967295, %s1191_s27   ;;  %s861_s29 = sadd.s32 4294967294, %s1191_s27   ;;  %s1191_s27 = sphi %s1249_s27, %s1461_s27   ;;  %s1187_s26 = sphi %s1247_s26, %s1460_s26   ;;  %s1183_s25 = sphi %s1245_s25, %s1459_s25   ;;  %s1179_s24 = sphi %s1243_s24, %s1458_s24  }
   0x6   : > { %s1268_s30 = sadd.s32 1, %s1191_s27   ;;  %s181_s8 = sadd.s32 1, %s1187_s26 }
   0x7   : > { %s178_s9 = ssub.s32 %s1191_s27, %s1268_s30  ;;  %p191_p0 = scmp.ne.s32.totalorder %s1187_s26, %s1183_s25 }
   0x8   : > { %p179_p1 = scmp.eq.s32.totalorder %s178_s9, 0  ;;  %p192_p2 = scmp.eq.s32.totalorder %s1264_s28, 1 }
   0x9   : > { %p197_p3 = scmp.ne.s32.totalorder %s1183_s25, %s1179_s24  ;;  %p198_p4 = scmp.eq.s32.totalorder %s861_s29, 1 }
   0xa   : > { %s1279_s10 = scalar_select %p179_p1, %s1187_s26, %s181_s8  }
   0xb   : > { %p1281_p5 = por %p192_p2, %p191_p0  ;;  %p1285_p6 = por %p198_p4, %p197_p3 }
   0xc   : > { %1445 = sst [smem:[#allocation11_spill]] %s1279_s10  ;;  %p862_p7 = scmp.ge.s32.totalorder %s1191_s27, 1 }
   0xd   : > { %s1446_s11 = scalar_select %p1281_p5, 1, 0 }
   0xe   : > { %s1447_s12 = scalar_select %p1285_p6, 1, 0 }
   0xf   : > { %p205_p8 = scmp.lt.s32.totalorder %s1191_s27, 3  ;;  %p1442_p9 = scmp.eq.s32.totalorder %s1264_s28, 0 }
  0x10   : > { %s1193_s14 = smov [#allocation2]   ;;  %s1194_s17 = smov [#allocation5]  }
  0x11   : > { %p1292_p10 = pnand %p862_p7, %p205_p8  ;;  %s223_s15 = sshll.u32 %s1193_s14, 4  ;;  %s224_s15 = int_to_ptr.vmem [resolvable:$true] %s223_s15 }
  0x12   : > { %s239_s18 = sshll.u32 %s1194_s17, 4  ;;  %s1065_s21 = scalar_lea.hbm %s1437_s3, 2048  ;;  %s1304_s18 = int_to_ptr.vmem [resolvable:$true] %s239_s18 }
  0x13   : > { %s1448_s13 = scalar_select %p1292_p10, 1, 0 }
  0x14   : > { %p966_p11 = pneg %p1292_p10  ;;  %p1066_p13 = scmp.ne.s32.totalorder %s1437_s3, %s1065_s21 }
  0x15   : > { %p1072_p3 = scmp.lt.u32.totalorder %s1065_s21, %s1437_s3 }
  0x16   : > { %p1300_p12 = pnand %p1442_p9, %p966_p11 }
  0x18   : > { %p1067_p0 = pneg %p1300_p12 }
  0x1a   : > { %p1068_p1 = pnand %p1067_p0, %p1066_p13 }
  0x1c   : > { %p1069_p2 = pneg %p1068_p1 }
  0x1e   : > { %p1074_p4 = pnand %p1072_p3, %p1069_p2 }
  0x20   : > { %1077 = shalt.err (!%p1074_p4)
}
  0x21   : > { %s1078_s9 = scalar_lea.vmem %s224_s15, 2048  ;;  %p1086_p9 = scmp.lt.s32.totalorder %s224_s15, %s224_s15 }
  0x22   : > { %p1079_p7 = scmp.ne.s32.totalorder %s224_s15, %s1078_s9  ;;  %p1087_p6 = scmp.lt.s32.totalorder %s1078_s9, %s1078_s9 }
  0x24   : > { %p1081_p8 = pnand %p1079_p7, %p1067_p0  ;;  %p1088_p5 = por %p1087_p6, %p1086_p9 }
  0x26   : > { %p1082_p11 = pneg %p1081_p8 }
  0x28   : > { %p1089_p10 = pnand %p1088_p5, %p1082_p11 }
  0x2a   : > { %1092 = shalt.err (!%p1089_p10)
}
  0x2b   : > { %s1195_s14 = smov 128   ;;  %s1196_s17 = smov 8  }
  0x2c   : > { %969 = dma.hbm_to_vmem [thread:$0]  (!%p1300_p12), %s1437_s3, 2048, %s224_s15, [#allocation3], %s1195_s14, %s1195_s14, %s1196_s17  }
  0x2d   : > { %s1093_s23 = scalar_lea.hbm %s1439_s5, 2048 }
  0x2e   : > { %p1094_p13 = scmp.ne.s32.totalorder %s1439_s5, %s1093_s23  ;;  %p1100_p9 = scmp.lt.u32.totalorder %s1093_s23, %s1439_s5 }
  0x30   : > { %p1096_p5 = pnand %p1094_p13, %p1067_p0 }
  0x32   : > { %p1097_p6 = pneg %p1096_p5 }
  0x34   : > { %p1102_p10 = pnand %p1100_p9, %p1097_p6 }
  0x36   : > { %1105 = shalt.err (!%p1102_p10)
}
  0x37   : > { %s1106_s15 = scalar_lea.vmem %s1304_s18, 2048  ;;  %p1114_p4 = scmp.lt.s32.totalorder %s1304_s18, %s1304_s18 }
  0x38   : > { %p1107_p1 = scmp.ne.s32.totalorder %s1304_s18, %s1106_s15  ;;  %p1115_p7 = scmp.lt.s32.totalorder %s1106_s15, %s1106_s15 }
  0x3a   : > { %p1109_p2 = pnand %p1107_p1, %p1067_p0  ;;  %p1116_p8 = por %p1115_p7, %p1114_p4 }
  0x3c   : > { %p1110_p3 = pneg %p1109_p2 }
  0x3e   : > { %p1117_p11 = pnand %p1116_p8, %p1110_p3 }
  0x40   : > { %1120 = shalt.err (!%p1117_p11)
}
  0x41   : > { %s1197_s10 = smov 64   ;;  %s1198_s14 = smov 4  }
  0x42   : > { %972 = dma.hbm_to_vmem [thread:$0]  (!%p1300_p12), %s1439_s5, 2048, %s1304_s18, [#allocation6], %s1197_s10, %s1197_s10, %s1198_s14  }
  0x43   : > { %p1450_p13 = scmp.ne.s32.totalorder %s1448_s13, 0 }
  0x44   : > { %p1451_p0 = scmp.eq.s32.totalorder (!%p1450_p13), %s1264_s28, 0 }
  0x45   : > { %267 = sbr.rel (%p1450_p13) target bundleno = 775 (0x307), region = 48 }
  0x4c   : > { %1166 = dma.done.wait (%p1451_p0), [#allocation3], 2048   ;;  %p1452_p5 = pmov %p1451_p0 }
  0x4d   : > { %p1453_p6 = pmov %p1451_p0 }
  0x4e   : > { %1168 = vsyncadd (%p1452_p5), [#allocation3], 4294965248 }
  0x4f   : > { %1170 = dma.done.wait (%p1453_p6), [#allocation6], 2048   ;;  %p1454_p9 = pmov %p1451_p0 }
  0x50   : > { %s870_s16 = sshll.u32 %s1264_s28, 2  ;;  %v1023_v0 = vld [vmem:[%s1435_s1] sm:$0xff]   ;;  %v1024_v1 = vld [vmem:[%s1435_s1 + $0x8] sm:$0xff]   ;;  %vm340_vm0 = vcmask 261120   ;;  %v1028_v9 = vld [vmem:[#allocation2 + $0x14] ss:$8 sps:$4 sm:$0xff]   ;;  %v420_v56 = vlaneseq }
  0x51   : > { %1172 = vsyncadd (%p1454_p9), [#allocation6], 4294965248  ;;  %p304_p10 = scmp.lt.s32.totalorder %s870_s16, 7  ;;  %948 = vmatprep.subr.bf16.mxu0 %v1023_v0  ;;  %v1025_v7 = vld [vmem:[#allocation2 + $0x4] ss:$8 sps:$4 sm:$0xff]   ;;  %v1199_v24 = vmov 0  }
  0x52   : > { %949 = vmatpush3.bf16.msra.mxu0 %v1023_v0  ;;  %v1027_v8 = vld [vmem:[#allocation2] ss:$8 sps:$4 sm:$0xff]   ;;  %510 = vmatprep.subr.bf16.mxu1 %v1025_v7  ;;  %v1030_v11 = vld [vmem:[#allocation2 + $0x10] ss:$8 sps:$4 sm:$0xff]   ;;  %v1031_v12 = vld [vmem:[#allocation2 + $0x24] ss:$8 sps:$4 sm:$0xff]  }
  0x53   : > { %s1463_s16 = smov (!%p304_p10, %s870_s16), 7  ;;  %950 = vmatprep.subr.bf16.mxu0 %v1024_v1  ;;  %511 = vmatpush1.bf16.msra.mxu1 %v1027_v8  ;;  %v1033_v13 = vld [vmem:[#allocation2 + $0x20] ss:$8 sps:$4 sm:$0xff]   ;;  %v1034_v14 = vld [vmem:[#allocation2 + $0x34] ss:$8 sps:$4 sm:$0xff]   ;;  %v421_v57 = vshrl.u32 %v420_v56, 7 }
  0x54   : > { %s871_s18 = sshll.u32 %s1463_s16, 3  ;;  %512 = vmatprep.subr.bf16.mxu1 %v1028_v9  ;;  %v1036_v15 = vld [vmem:[#allocation2 + $0x30] ss:$8 sps:$4 sm:$0xff]   ;;  %v1037_v16 = vld [vmem:[#allocation2 + $0x44] ss:$8 sps:$4 sm:$0xff]   ;;  %542 = vmatprep.mubr.bf16.mxu1 %v1199_v24  ;;  %s300_s17 = sand.u32 1, %s1183_s25  }
  0x55   : > { %s307_s21 = scalar_lea.vmem %s1434_s0, %s871_s18  ;;  %v1039_v17 = vld [vmem:[#allocation2 + $0x40] ss:$8 sps:$4 sm:$0xff]   ;;  %v1040_v18 = vld [vmem:[#allocation2 + $0x54] ss:$8 sps:$4 sm:$0xff]   ;;  %v1042_v19 = vld [vmem:[#allocation2 + $0x50] ss:$8 sps:$4 sm:$0xff]  }
  0x56   : > { %v311_v2 = vld [vmem:[%s307_s21] sm:$0xff]  ;;  %v312_v3 = vld [vmem:[%s307_s21 + $0x8] sm:$0xff]  ;;  %v313_v4 = vld [vmem:[%s307_s21 + $0x10] sm:$0xff]  ;;  %951 = vmatpush3.bf16.msra.mxu0 %v1024_v1  ;;  %v422_v58 = vsub.s32 0, %v421_v57  ;;  %v426_v60 = vsub.s32 1, %v421_v57  ;;  %s869_s19 = sshll.u32 %s300_s17, 5 }
  0x57   : > { %v315_v5 = vpack.c.bf16 %v312_v3, %v311_v2  ;;  %v314_v6 = vld [vmem:[%s307_s21 + $0x18] sm:$0xff]  ;;  %513 = vmatpush1.bf16.msra.mxu1 %v1030_v11  ;;  %v1043_v20 = vld [vmem:[#allocation2 + $0x64] ss:$8 sps:$4 sm:$0xff]   ;;  %v1045_v21 = vld [vmem:[#allocation2 + $0x60] ss:$8 sps:$4 sm:$0xff]   ;;  %s302_s20 = scalar_lea.vmem [#allocation7], %s869_s19 }
  0x58   : > { %v316_v10 = vpack.c.bf16 %v314_v6, %v313_v4  ;;  %514 = vmatprep.subr.bf16.mxu1 %v1031_v12  ;;  %v1046_v22 = vld [vmem:[#allocation2 + $0x74] ss:$8 sps:$4 sm:$0xff]   ;;  %v1048_v23 = vld [vmem:[#allocation2 + $0x70] ss:$8 sps:$4 sm:$0xff]   ;;  %v1049_v25 = vld [vmem:[#allocation5 + $0x40] sm:$0xff]   ;;  %s777_s13 = sshll.u32 %s302_s20, 4  ;;  %s1386_s13 = int_to_ptr.vmem [resolvable:$true] %s777_s13 }
  0x59   : > { %952 = vmatprep.mubr.msk.bf16.mxu0 %vm340_vm0, %v315_v5  ;;  %v1050_v26 = vld [vmem:[#allocation5] sm:$0xff]   ;;  %v1051_v27 = vld [vmem:[#allocation5 + $0x48] sm:$0xff]   ;;  %920 = vmatprep.subr.bf16.mxu0 %v1049_v25  ;;  %v1053_v29 = vld [vmem:[#allocation5 + $0x50] sm:$0xff]   ;;  %s915_s21 = sshll.u32 %s1264_s28, 9  ;;  %s1393_s8 = scalar_lea.sflag [#allocation4], %s300_s17 }
  0x5a   : > { %953 = vmatmul.mubr.msk.bf16.vlgmr.msra.gmra.mrb[0].mxu0 %vm340_vm0, %v316_v10  ;;  %v1052_v28 = vld [vmem:[#allocation5 + $0x8] sm:$0xff]   ;;  %v1054_v30 = vld [vmem:[#allocation5 + $0x10] sm:$0xff]   ;;  %v1055_v31 = vld [vmem:[#allocation5 + $0x58] sm:$0xff]   ;;  %s1391_s29 = scalar_lea.hbm %s1441_s7, %s915_s21  ;;  %s1121_s9 = scalar_lea.vmem %s1386_s13, 512 }
  0x5b   : > { %515 = vmatpush1.bf16.msra.mxu1 %v1033_v13  ;;  %921 = vmatpush3.bf16.msra.mxu0 %v1050_v26  ;;  %v1056_v32 = vld [vmem:[#allocation5 + $0x18] sm:$0xff]   ;;  %v1057_v33 = vld [vmem:[#allocation5 + $0x60] sm:$0xff]   ;;  %v1059_v35 = vld [vmem:[#allocation5 + $0x68] sm:$0xff]   ;;  %p1122_p12 = scmp.ne.s32.totalorder %s1386_s13, %s1121_s9  ;;  %p1455_p1 = scmp.ne.s32.totalorder %s1446_s11, 0 }
  0x5c   : > { %516 = vmatprep.subr.bf16.mxu1 %v1034_v14  ;;  %922 = vmatprep.subr.bf16.mxu0 %v1051_v27  ;;  %v1058_v34 = vld [vmem:[#allocation5 + $0x20] sm:$0xff]   ;;  %v1060_v51 = vld [vmem:[#allocation5 + $0x28] sm:$0xff]   ;;  %v1061_v52 = vld [vmem:[#allocation5 + $0x70] sm:$0xff]   ;;  %s1200_s28 = smov [#allocation7]  }
  0x5d   : > { %v872_v36 = vld [vmem:[%s1436_s2] ss:$0 sm:$0xff]  ;;  %v1062_v53 = vld [vmem:[#allocation5 + $0x30] sm:$0xff]   ;;  %v1063_v54 = vld [vmem:[#allocation5 + $0x78] sm:$0xff]   ;;  %p1123_p2 = pnand %p1122_p12, %p1455_p1  ;;  %s1125_s15 = sshll.u32 %s1200_s28, 4  ;;  %s1126_s15 = int_to_ptr.vmem [resolvable:$false] %s1125_s15 }
  0x5e   : > { %v1064_v55 = vld [vmem:[#allocation5 + $0x38] sm:$0xff]   ;;  %v418_v59 = vld [vmem:[%s1438_s4] sm:$0x3]  ;;  %s1127_s10 = scalar_lea.vmem %s1126_s15, 1024  ;;  %p1128_p4 = scmp.lt.s32.totalorder %s1386_s13, %s1126_s15 }
  0x5f   : > { %517 = vmatpush1.bf16.msra.mxu1 %v1036_v15  ;;  %923 = vmatpush3.bf16.msra.mxu0 %v1052_v28  ;;  %v423_v61 = vrot.slane %v418_v59, %v422_v58  ;;  %v427_v62 = vrot.slane %v418_v59, %v426_v60  ;;  %v893_v28 = vld [vmem:[%s1440_s6] ss:$0 sm:$0xff]  ;;  %p1124_p3 = pneg %p1123_p2  ;;  %p1129_p7 = scmp.lt.s32.totalorder %s1127_s10, %s1121_s9 }
  0x60   : > { %518 = vmatprep.subr.bf16.mxu1 %v1037_v16  ;;  %924 = vmatprep.subr.bf16.mxu0 %v1053_v29 }
  0x61   : > { %p1130_p8 = por %p1129_p7, %p1128_p4 }
  0x63   : > { %519 = vmatpush1.bf16.msra.mxu1 %v1039_v17  ;;  %925 = vmatpush3.bf16.msra.mxu0 %v1054_v30  ;;  %p1131_p11 = pnand %p1130_p8, %p1124_p3 }
  0x64   : > { %520 = vmatprep.subr.bf16.mxu1 %v1040_v18  ;;  %926 = vmatprep.subr.bf16.mxu0 %v1055_v31 }
  0x67   : > { %521 = vmatpush1.bf16.msra.mxu1 %v1042_v19  ;;  %927 = vmatpush3.bf16.msra.mxu0 %v1056_v32 }
  0x68   : > { %522 = vmatprep.subr.bf16.mxu1 %v1043_v20  ;;  %928 = vmatprep.subr.bf16.mxu0 %v1057_v33 }
  0x6b   : > { %523 = vmatpush1.bf16.msra.mxu1 %v1045_v21  ;;  %929 = vmatpush3.bf16.msra.mxu0 %v1058_v34 }
  0x6c   : > { %524 = vmatprep.subr.bf16.mxu1 %v1046_v22  ;;  %930 = vmatprep.subr.bf16.mxu0 %v1059_v35 }
  0x6f   : > { %525 = vmatpush1.bf16.msra.mxu1 %v1048_v23  ;;  %931 = vmatpush3.bf16.msra.mxu0 %v1060_v51 }
  0x70   : > { %932 = vmatprep.subr.bf16.mxu0 %v1061_v52 }
  0x73   : > { %933 = vmatpush3.bf16.msra.mxu0 %v1062_v53 }
  0x74   : > { %934 = vmatprep.subr.bf16.mxu0 %v1063_v54 }
  0x77   : > { %935 = vmatpush3.bf16.msra.mxu0 %v1064_v55 }
 0x12d   : > { %v954_v37 = vpop.f32.mrb[0].mxu0 }
 0x12e   : > { %v390_v38 = vadd.f32 %v954_v37, %v872_v36  ;;  %v381_v39 = vpop.f32.mrb[1].mxu0 }
 0x12f   : > { %v382_v40 = vadd.f32 %v872_v36, %v381_v39  ;;  %v955_v41 = vpop.f32.mrb[2].mxu0 }
 0x130   : > { %v393_v42 = vadd.f32 %v955_v41, %v872_v36  ;;  %v384_v43 = vpop.f32.mrb[3].mxu0  ;;  %v398_v45 = vmax.f32 %v390_v38, 0.0 }
 0x131   : > { %v385_v44 = vadd.f32 %v872_v36, %v384_v43  ;;  %v396_v47 = vmax.f32 %v382_v40, 0.0 }
 0x132   : > { %v399_v46 = vmax.f32 %v393_v42, 0.0 }
 0x133   : > { %v397_v48 = vmax.f32 %v385_v44, 0.0 }
 0x134   : > { %v401_v49 = vpack.c.bf16 %v399_v46, %v398_v45 }
 0x135   : > { %v400_v50 = vpack.c.bf16 %v397_v48, %v396_v47 }
 0x137   : > { %543 = vmatmul.mubr.bf16.vlgmr.msra.gmra.mrb[0].mxu1 %v400_v50 }
 0x138   : > { %552 = vmatprep.mubr.bf16.mxu1 %v1199_v24 }
 0x13f   : > { %553 = vmatmul.mubr.bf16.gmra.mrb[4].mxu1 %v401_v49 }
 0x20a   : > { %v544_v63 = vpop.f32.mrb[0].mxu1 }
 0x20b   : > { %v545_v0 = vadd.f32 %v544_v63, %v423_v61  ;;  %v546_v1 = vpop.f32.mrb[1].mxu1 }
 0x20c   : > { %v547_v2 = vadd.f32 %v546_v1, %v427_v62  ;;  %v548_v3 = vpop.f32.mrb[2].mxu1 }
 0x20d   : > { %v549_v4 = vadd.f32 %v548_v3, %v423_v61  ;;  %v550_v5 = vpop.f32.mrb[3].mxu1  ;;  %v563_v7 = vmax.f32 %v545_v0, 0.0 }
 0x20e   : > { %v551_v6 = vadd.f32 %v550_v5, %v427_v62  ;;  %v564_v9 = vmax.f32 %v547_v2, 0.0 }
 0x20f   : > { %v565_v8 = vmax.f32 %v549_v4, 0.0 }
 0x210   : > { %v566_v10 = vmax.f32 %v551_v6, 0.0 }
 0x211   : > { %v571_v11 = vpack.c.bf16 %v565_v8, %v563_v7 }
 0x212   : > { %v572_v12 = vpack.c.bf16 %v566_v10, %v564_v9  ;;  %v554_v13 = vpop.f32.mrb[4].mxu1 }
 0x213   : > { %v555_v14 = vadd.f32 %v554_v13, %v423_v61  ;;  %v556_v15 = vpop.f32.mrb[5].mxu1 }
 0x214   : > { %v557_v16 = vadd.f32 %v556_v15, %v427_v62  ;;  %v558_v17 = vpop.f32.mrb[6].mxu1  ;;  %742 = vmatprep.mubr.bf16.mxu0 %v572_v12 }
 0x215   : > { %v559_v18 = vadd.f32 %v558_v17, %v423_v61  ;;  %v560_v19 = vpop.f32.mrb[7].mxu1  ;;  %743 = vmatmul.mubr.bf16.vlgmr.msra.gmra.mrb[4].mxu0 %v571_v11  ;;  %v567_v21 = vmax.f32 %v555_v14, 0.0 }
 0x216   : > { %v561_v20 = vadd.f32 %v560_v19, %v427_v62  ;;  %v568_v23 = vmax.f32 %v557_v16, 0.0 }
 0x217   : > { %v569_v22 = vmax.f32 %v559_v18, 0.0 }
 0x218   : > { %v570_v24 = vmax.f32 %v561_v20, 0.0 }
 0x219   : > { %v573_v25 = vpack.c.bf16 %v569_v22, %v567_v21 }
 0x21a   : > { %v574_v26 = vpack.c.bf16 %v570_v24, %v568_v23 }
 0x21c   : > { %750 = vmatprep.mubr.bf16.mxu0 %v574_v26 }
 0x21d   : > { %751 = vmatmul.mubr.bf16.gmra.mrb[8].mxu0 %v573_v25 }
 0x2e8   : > { %v936_v27 = vpop.f32.mrb[4].mxu0 }
 0x2e9   : > { %v937_v29 = vpop.f32.mrb[5].mxu0 }
 0x2ea   : > { %v938_v30 = vadd.f32 %v937_v29, %v936_v27  ;;  %v939_v31 = vpop.f32.mrb[6].mxu0 }
 0x2eb   : > { %v940_v32 = vpop.f32.mrb[7].mxu0 }
 0x2ec   : > { %v745_v33 = vadd.f32 %v938_v30, %v893_v28  ;;  %v941_v34 = vadd.f32 %v940_v32, %v939_v31 }
 0x2ee   : > { %759 = vst [vmem:[%s302_s20] sm:$0xff] %v745_v33  ;;  %v748_v35 = vadd.f32 %v941_v34, %v893_v28 }
 0x2f0   : > { %760 = vst [vmem:[%s302_s20 + $0x8] sm:$0xff] %v748_v35  ;;  %v942_v36 = vpop.f32.mrb[8].mxu0 }
 0x2f1   : > { %v943_v37 = vpop.f32.mrb[9].mxu0 }
 0x2f2   : > { %v944_v38 = vadd.f32 %v943_v37, %v942_v36  ;;  %v945_v39 = vpop.f32.mrb[10].mxu0 }
 0x2f3   : > { %v946_v40 = vpop.f32.mrb[11].mxu0 }
 0x2f4   : > { %v753_v41 = vadd.f32 %v944_v38, %v893_v28  ;;  %v947_v42 = vadd.f32 %v946_v40, %v945_v39 }
 0x2f6   : > { %761 = vst [vmem:[%s302_s20 + $0x10] sm:$0xff] %v753_v41  ;;  %v756_v43 = vadd.f32 %v947_v42, %v893_v28 }
 0x2f8   : > { %762 = vst [vmem:[%s302_s20 + $0x18] sm:$0xff] %v756_v43 }
 0x2f9   : > { %1134 = shalt.err (!%p1131_p11)
}
 0x2fa   : > { %s1135_s14 = scalar_lea.hbm %s1391_s29, 512  ;;  %s1139_s16 = scalar_lea.hbm %s1441_s7, 1024 }
 0x2fb   : > { %p1136_p13 = scmp.ne.s32.totalorder %s1391_s29, %s1135_s14  ;;  %p1140_p6 = scmp.lt.u32.totalorder %s1391_s29, %s1441_s7 }
 0x2fc   : > { %p1141_p9 = scmp.lt.u32.totalorder %s1139_s16, %s1135_s14  ;;  %p1143_p12 = scmp.lt.u32.totalorder %s1135_s14, %s1391_s29 }
 0x2fd   : > { %p1137_p0 = pnand %p1136_p13, %p1455_p1 }
 0x2fe   : > { %p1142_p10 = por %p1141_p9, %p1140_p6 }
 0x2ff   : > { %p1138_p5 = pneg %p1137_p0 }
 0x300   : > { %p1144_p2 = por %p1143_p12, %p1142_p10 }
 0x302   : > { %p1145_p3 = pnand %p1144_p2, %p1138_p5 }
 0x304   : > { %1148 = shalt.err (!%p1145_p3)
}
 0x305   : > { %s1201_s21 = smov 128   ;;  %s1202_s22 = smov 8  }
 0x306   : > { %964 = dma.vmem_to_hbm [thread:$0]  (%p1455_p1), %s1386_s13, 512, %s1391_s29, %s1393_s8, %s1201_s21, %s1201_s21, %s1202_s22  }
 0x307 PF: > { %p981_p4 = scmp.ge.s32.totalorder %s1191_s27, 2  ;;  %s792_s23 = sand.u32 1, %s1179_s24  }
 0x308   : > { %p1456_p7 = scmp.ne.s32.totalorder %s1447_s12, 0  ;;  %s793_s9 = scalar_lea.sflag [#allocation4], %s792_s23 }
 0x30a   : > { %p974_p8 = pnand %p981_p4, %p1456_p7 }
 0x30c   : > { %1174 = dma.done.wait (!%p974_p8), %s793_s9, 512  }
 0x30d   : > { %1176 = vsyncadd (!%p974_p8), %s793_s9, 4294966784  ;;  %s1457_s28 = sld [smem:[#allocation11_spill]]  ;;  %p19_p11 = scmp.ge.s32.totalorder %s1268_s30, 4  }
 0x30e   : > { %s1458_s24 = smov %s1183_s25  ;;  %s1459_s25 = smov %s1187_s26 }
 0x30f   : > { %s1461_s27 = smov %s1268_s30  ;;  %21 = sbr.rel (!%p19_p11) target bundleno = 5 (0x5), region = 92 }
 0x313   : > { %s1460_s26 = smov %s1457_s28 }
 0x316   :  { %798 = vsyncpa [#allocation3], 1 }
 0x317   :  { %800 = vsyncpa [#allocation3 + $0x1], 1 }
 0x318   :  { %801 = vsyncpa [#allocation6], 1 }
 0x319   :  { %802 = vsyncpa [#allocation4], 1 }
 0x31a   :  { %804 = vsyncpa [#allocation4 + $0x1], 1 }

</bundles_post_ra>
